<compile_context>
chip_gen: v7x
topology: tpu7x:2x2x1
jax: 0.10.0
libtpu: 0.0.40
codegen_flags: <defaults>
</compile_context>

<pallas_src>
import jax
import jax.numpy as jnp
from jax.experimental import pallas as pl
from jax.experimental.pallas import tpu as pltpu

_LANE = 128  # lane width; interior batch tiles are a multiple of this.


def _round_up(n, m):
    return ((n + m - 1) // m) * m


def _disc_kernel(xT_ref,
                 w1_ref, b1_ref,
                 w2_ref, b2_ref,
                 w3_ref, b3_ref,
                 w4_ref, b4_ref,
                 o_ref):
    # xT_ref: (n_features, TB) bf16 — batch on lanes.
    x = xT_ref[...]

    # Layer 1: (32, nf) @ (nf, TB) -> (32, TB); bf16 operands, f32 accumulate.
    h = jnp.dot(w1_ref[...], x, preferred_element_type=jnp.float32) + b1_ref[...]
    h = jnp.maximum(h, 0.0).astype(jnp.bfloat16)

    # Layer 2: (16, 32) @ (32, TB) -> (16, TB)
    h = jnp.dot(w2_ref[...], h, preferred_element_type=jnp.float32) + b2_ref[...]
    h = jnp.maximum(h, 0.0).astype(jnp.bfloat16)

    # Layer 3: (4, 16) @ (16, TB) -> (4, TB)
    h = jnp.dot(w3_ref[...], h, preferred_element_type=jnp.float32) + b3_ref[...]
    h = jnp.maximum(h, 0.0).astype(jnp.bfloat16)

    # Layer 4: (1, 4) @ (4, TB) -> (1, TB), sigmoid in f32. Lane-dense store.
    h = jnp.dot(w4_ref[...], h, preferred_element_type=jnp.float32) + b4_ref[...]
    o_ref[...] = jax.nn.sigmoid(h).astype(o_ref.dtype)


def discriminator_forward_xt(xT, params, *, tile_batch=32768):
    """Fast path.

    xT: (n_features, batch), ideally already bf16 (emit this layout from the
    upstream op to avoid any pre-pass). Returns lane-dense (1, batch) f32.
    """
    n_features, batch = xT.shape
    xT = xT.astype(jnp.bfloat16)  # no-op if already bf16

    # Weights in bf16 for the MXU (ideally stored bf16 by the caller); biases f32.
    w1 = params["w1"].astype(jnp.bfloat16)
    w2 = params["w2"].astype(jnp.bfloat16)
    w3 = params["w3"].astype(jnp.bfloat16)
    w4 = params["w4"].astype(jnp.bfloat16)
    b1 = params["b1"].astype(jnp.float32)
    b2 = params["b2"].astype(jnp.float32)
    b3 = params["b3"].astype(jnp.float32)
    b4 = params["b4"].astype(jnp.float32)

    # Tile sizing: interior tiles are a multiple of 128 lanes; if a single tile
    # covers the whole batch, use the exact batch (full-dim block is allowed
    # for any size).  Remainder is handled by Pallas's partial last block.
    tb = min(_round_up(max(tile_batch, 1), _LANE), _round_up(batch, _LANE))
    if tb >= batch:
        tb = batch
    grid = (pl.cdiv(batch, tb),)

    const = lambda a: pl.BlockSpec(a.shape, lambda i: (0, 0))

    return pl.pallas_call(
        _disc_kernel,
        out_shape=jax.ShapeDtypeStruct((1, batch), jnp.float32),
        grid=grid,
        in_specs=[
            pl.BlockSpec((n_features, tb), lambda i: (0, i)),  # x^T tile
            const(w1), const(b1),
            const(w2), const(b2),
            const(w3), const(b3),
            const(w4), const(b4),
        ],
        out_specs=pl.BlockSpec((1, tb), lambda i: (0, i)),
        compiler_params=pltpu.CompilerParams(
            dimension_semantics=("parallel",),
            vmem_limit_bytes=40 * 1024 * 1024),
    )(xT, w1, b1, w2, b2, w3, b3, w4, b4)


def discriminator_forward(x, params, *, tile_batch=32768):
    """Torch-parity API: x (batch, n_features) f32 -> (batch, 1) f32.

    Does a single fused transpose+cast (no zero-fill / no padded copy). For
    best performance, produce x as (n_features, batch) bf16 upstream and call
    discriminator_forward_xt directly.
    """
    xT = x.T.astype(jnp.bfloat16)
    out = discriminator_forward_xt(xT, params, tile_batch=tile_batch)
    return out[0, :, None]  # (batch, 1) — reshape only in the parity wrapper


def init_params(key, n_features):
    """PyTorch-Linear-style init (uniform +/- 1/sqrt(fan_in)).
    Weights stored as (out, in) — same as torch — biases as (out, 1)."""
    dims = [(32, n_features), (16, 32), (4, 16), (1, 4)]
    params = {}
    for i, (fan_out, fan_in) in enumerate(dims, start=1):
        key, kw, kb = jax.random.split(key, 3)
        bound = 1.0 / jnp.sqrt(fan_in)
        params[f"w{i}"] = jax.random.uniform(
            kw, (fan_out, fan_in), jnp.float32, -bound, bound)
        params[f"b{i}"] = jax.random.uniform(
            kb, (fan_out, 1), jnp.float32, -bound, bound)
    return params


def _reference_forward(x, params):
    # Mirror the kernel's quantization: x, all weights and inter-layer
    # activations rounded to bf16; accumulation/bias/ReLU/sigmoid in f32.
    # (Intentional precision change vs. the pure-f32 PyTorch module.)
    f32 = jnp.float32

    def lin(h, w, b):
        wq = w.astype(jnp.bfloat16).astype(f32)
        return h @ wq.T + b.T

    h = x.astype(jnp.bfloat16).astype(f32)
    h = jnp.maximum(lin(h, params["w1"], params["b1"]), 0.0)
    h = h.astype(jnp.bfloat16).astype(f32)
    h = jnp.maximum(lin(h, params["w2"], params["b2"]), 0.0)
    h = h.astype(jnp.bfloat16).astype(f32)
    h = jnp.maximum(lin(h, params["w3"], params["b3"]), 0.0)
    h = h.astype(jnp.bfloat16).astype(f32)
    return jax.nn.sigmoid(lin(h, params["w4"], params["b4"]))


if __name__ == "__main__":
    key = jax.random.PRNGKey(0)
    kx1, kp1, kx2, kp2 = jax.random.split(key, 4)

    # Test 1: small single-tile case through the torch-parity API.
    n_features, batch = 8, 4
    x = jax.random.normal(kx1, (batch, n_features), jnp.float32)
    params = init_params(kp1, n_features)
    out = jax.block_until_ready(discriminator_forward(x, params))
    ref = _reference_forward(x, params)
    assert out.shape == (batch, 1), out.shape
    assert jnp.allclose(out, ref, atol=5e-3, rtol=5e-3), (out, ref)

    # Test 2: multi-tile grid with a remainder block and n_features not a
    # multiple of 8 (correctness concern from the review).
    n_features2, batch2 = 6, 300
    x2 = jax.random.normal(kx2, (batch2, n_features2), jnp.float32)
    params2 = init_params(kp2, n_features2)
    out2 = jax.block_until_ready(
        discriminator_forward(x2, params2, tile_batch=128))  # grid = 3 tiles
    ref2 = _reference_forward(x2, params2)
    assert out2.shape == (batch2, 1), out2.shape
    assert jnp.allclose(out2, ref2, atol=5e-3, rtol=5e-3)

    print("KERNEL_OK")
</pallas_src>

<mosaic_0001>
module attributes {stable_mosaic.version = 11 : i64} {
  func.func @_disc_kernel(%arg0: i32, %arg1: memref<8x4xbf16, #tpu.memory_space<vmem>>, %arg2: memref<32x8xbf16, #tpu.memory_space<vmem>>, %arg3: memref<32x1xf32, #tpu.memory_space<vmem>>, %arg4: memref<16x32xbf16, #tpu.memory_space<vmem>>, %arg5: memref<16x1xf32, #tpu.memory_space<vmem>>, %arg6: memref<4x16xbf16, #tpu.memory_space<vmem>>, %arg7: memref<4x1xf32, #tpu.memory_space<vmem>>, %arg8: memref<1x4xbf16, #tpu.memory_space<vmem>>, %arg9: memref<1x1xf32, #tpu.memory_space<vmem>>, %arg10: memref<1x4xf32, #tpu.memory_space<vmem>>) attributes {dimension_semantics = [#tpu.dimension_semantics<parallel>], iteration_bounds = array<i64: 1>, scalar_prefetch = 0 : i64, scratch_operands = 0 : i64, tpu.core_type = #tpu.core_type<tc>, window_params = [{transform_indices = @transform_0, window_bounds = array<i64: 8, 4>}, {pipeline_mode = #tpu.pipeline_mode<synchronous>, transform_indices = @transform_1, window_bounds = array<i64: 32, 8>}, {pipeline_mode = #tpu.pipeline_mode<synchronous>, transform_indices = @transform_2, window_bounds = array<i64: 32, 1>}, {pipeline_mode = #tpu.pipeline_mode<synchronous>, transform_indices = @transform_3, window_bounds = array<i64: 16, 32>}, {pipeline_mode = #tpu.pipeline_mode<synchronous>, transform_indices = @transform_4, window_bounds = array<i64: 16, 1>}, {pipeline_mode = #tpu.pipeline_mode<synchronous>, transform_indices = @transform_5, window_bounds = array<i64: 4, 16>}, {pipeline_mode = #tpu.pipeline_mode<synchronous>, transform_indices = @transform_6, window_bounds = array<i64: 4, 1>}, {pipeline_mode = #tpu.pipeline_mode<synchronous>, transform_indices = @transform_7, window_bounds = array<i64: 1, 4>}, {pipeline_mode = #tpu.pipeline_mode<synchronous>, transform_indices = @transform_8, window_bounds = array<i64: 1, 1>}, {transform_indices = @transform_9, window_bounds = array<i64: 1, 4>}]} {
    %c0 = arith.constant 0 : index
    %c0_0 = arith.constant 0 : index
    %0 = vector.load %arg1[%c0, %c0_0] : memref<8x4xbf16, #tpu.memory_space<vmem>>, vector<8x4xbf16>
    %c0_1 = arith.constant 0 : index
    %c0_2 = arith.constant 0 : index
    %1 = vector.load %arg2[%c0_1, %c0_2] : memref<32x8xbf16, #tpu.memory_space<vmem>>, vector<32x8xbf16>
    %cst = arith.constant dense<0.000000e+00> : vector<32x4xf32>
    %2 = tpu.matmul %1, %0, %cst {dimension_numbers = #tpu.dot_dimension_numbers<[1], [0], [0], [1], [0, 0, 1, 1], [], []>} : vector<32x8xbf16>, vector<8x4xbf16>, vector<32x4xf32> -> vector<32x4xf32>
    %c0_3 = arith.constant 0 : index
    %c0_4 = arith.constant 0 : index
    %3 = vector.load %arg3[%c0_3, %c0_4] : memref<32x1xf32, #tpu.memory_space<vmem>>, vector<32x1xf32>
    %4 = vector.broadcast %3 : vector<32x1xf32> to vector<32x4xf32>
    %5 = arith.addf %2, %4 : vector<32x4xf32>
    %cst_5 = arith.constant 0.000000e+00 : f32
    %6 = vector.broadcast %cst_5 : f32 to vector<32x4xf32>
    %7 = arith.maximumf %5, %6 : vector<32x4xf32>
    %8 = arith.truncf %7 : vector<32x4xf32> to vector<32x4xbf16>
    %c0_6 = arith.constant 0 : index
    %c0_7 = arith.constant 0 : index
    %9 = vector.load %arg4[%c0_6, %c0_7] : memref<16x32xbf16, #tpu.memory_space<vmem>>, vector<16x32xbf16>
    %cst_8 = arith.constant dense<0.000000e+00> : vector<16x4xf32>
    %10 = tpu.matmul %9, %8, %cst_8 {dimension_numbers = #tpu.dot_dimension_numbers<[1], [0], [0], [1], [0, 0, 1, 1], [], []>} : vector<16x32xbf16>, vector<32x4xbf16>, vector<16x4xf32> -> vector<16x4xf32>
    %c0_9 = arith.constant 0 : index
    %c0_10 = arith.constant 0 : index
    %11 = vector.load %arg5[%c0_9, %c0_10] : memref<16x1xf32, #tpu.memory_space<vmem>>, vector<16x1xf32>
    %12 = vector.broadcast %11 : vector<16x1xf32> to vector<16x4xf32>
    %13 = arith.addf %10, %12 : vector<16x4xf32>
    %cst_11 = arith.constant 0.000000e+00 : f32
    %14 = vector.broadcast %cst_11 : f32 to vector<16x4xf32>
    %15 = arith.maximumf %13, %14 : vector<16x4xf32>
    %16 = arith.truncf %15 : vector<16x4xf32> to vector<16x4xbf16>
    %c0_12 = arith.constant 0 : index
    %c0_13 = arith.constant 0 : index
    %17 = vector.load %arg6[%c0_12, %c0_13] : memref<4x16xbf16, #tpu.memory_space<vmem>>, vector<4x16xbf16>
    %cst_14 = arith.constant dense<0.000000e+00> : vector<4x4xf32>
    %18 = tpu.matmul %17, %16, %cst_14 {dimension_numbers = #tpu.dot_dimension_numbers<[1], [0], [0], [1], [0, 0, 1, 1], [], []>} : vector<4x16xbf16>, vector<16x4xbf16>, vector<4x4xf32> -> vector<4x4xf32>
    %c0_15 = arith.constant 0 : index
    %c0_16 = arith.constant 0 : index
    %19 = vector.load %arg7[%c0_15, %c0_16] : memref<4x1xf32, #tpu.memory_space<vmem>>, vector<4x1xf32>
    %20 = vector.broadcast %19 : vector<4x1xf32> to vector<4x4xf32>
    %21 = arith.addf %18, %20 : vector<4x4xf32>
    %cst_17 = arith.constant 0.000000e+00 : f32
    %22 = vector.broadcast %cst_17 : f32 to vector<4x4xf32>
    %23 = arith.maximumf %21, %22 : vector<4x4xf32>
    %24 = arith.truncf %23 : vector<4x4xf32> to vector<4x4xbf16>
    %c0_18 = arith.constant 0 : index
    %c0_19 = arith.constant 0 : index
    %25 = vector.load %arg8[%c0_18, %c0_19] : memref<1x4xbf16, #tpu.memory_space<vmem>>, vector<1x4xbf16>
    %cst_20 = arith.constant dense<0.000000e+00> : vector<1x4xf32>
    %26 = tpu.matmul %25, %24, %cst_20 {dimension_numbers = #tpu.dot_dimension_numbers<[1], [0], [0], [1], [0, 0, 1, 1], [], []>} : vector<1x4xbf16>, vector<4x4xbf16>, vector<1x4xf32> -> vector<1x4xf32>
    %c0_21 = arith.constant 0 : index
    %c0_22 = arith.constant 0 : index
    %27 = vector.load %arg9[%c0_21, %c0_22] : memref<1x1xf32, #tpu.memory_space<vmem>>, vector<1x1xf32>
    %28 = vector.broadcast %27 : vector<1x1xf32> to vector<1x4xf32>
    %29 = arith.addf %26, %28 : vector<1x4xf32>
    %30 = arith.negf %29 : vector<1x4xf32>
    %31 = math.exp %30 : vector<1x4xf32>
    %cst_23 = arith.constant 1.000000e+00 : f32
    %32 = vector.broadcast %cst_23 : f32 to vector<1x4xf32>
    %33 = arith.addf %32, %31 : vector<1x4xf32>
    %34 = arith.divf %32, %33 : vector<1x4xf32>
    %c0_24 = arith.constant 0 : index
    %c0_25 = arith.constant 0 : index
    %35 = vector.load %arg10[%c0_24, %c0_25] : memref<1x4xf32, #tpu.memory_space<vmem>>, vector<1x4xf32>
    tpu.vector_store %arg10[%c0_24, %c0_25], %34 {strides = array<i32>} : memref<1x4xf32, #tpu.memory_space<vmem>>, vector<1x4xf32>,
    return
  }
  func.func @transform_0(%arg0: i32) -> (i32, i32) {
    %c0_i32 = arith.constant 0 : i32
    %c0_i32_0 = arith.constant 0 : i32
    return %c0_i32, %arg0 : i32, i32
  }
  func.func @transform_1(%arg0: i32) -> (i32, i32) {
    %c0_i32 = arith.constant 0 : i32
    %c0_i32_0 = arith.constant 0 : i32
    %c0_i32_1 = arith.constant 0 : i32
    return %c0_i32, %c0_i32_0 : i32, i32
  }
  func.func @transform_2(%arg0: i32) -> (i32, i32) {
    %c0_i32 = arith.constant 0 : i32
    %c0_i32_0 = arith.constant 0 : i32
    %c0_i32_1 = arith.constant 0 : i32
    return %c0_i32, %c0_i32_0 : i32, i32
  }
  func.func @transform_3(%arg0: i32) -> (i32, i32) {
    %c0_i32 = arith.constant 0 : i32
    %c0_i32_0 = arith.constant 0 : i32
    %c0_i32_1 = arith.constant 0 : i32
    return %c0_i32, %c0_i32_0 : i32, i32
  }
  func.func @transform_4(%arg0: i32) -> (i32, i32) {
    %c0_i32 = arith.constant 0 : i32
    %c0_i32_0 = arith.constant 0 : i32
    %c0_i32_1 = arith.constant 0 : i32
    return %c0_i32, %c0_i32_0 : i32, i32
  }
  func.func @transform_5(%arg0: i32) -> (i32, i32) {
    %c0_i32 = arith.constant 0 : i32
    %c0_i32_0 = arith.constant 0 : i32
    %c0_i32_1 = arith.constant 0 : i32
    return %c0_i32, %c0_i32_0 : i32, i32
  }
  func.func @transform_6(%arg0: i32) -> (i32, i32) {
    %c0_i32 = arith.constant 0 : i32
    %c0_i32_0 = arith.constant 0 : i32
    %c0_i32_1 = arith.constant 0 : i32
    return %c0_i32, %c0_i32_0 : i32, i32
  }
  func.func @transform_7(%arg0: i32) -> (i32, i32) {
    %c0_i32 = arith.constant 0 : i32
    %c0_i32_0 = arith.constant 0 : i32
    %c0_i32_1 = arith.constant 0 : i32
    return %c0_i32, %c0_i32_0 : i32, i32
  }
  func.func @transform_8(%arg0: i32) -> (i32, i32) {
    %c0_i32 = arith.constant 0 : i32
    %c0_i32_0 = arith.constant 0 : i32
    %c0_i32_1 = arith.constant 0 : i32
    return %c0_i32, %c0_i32_0 : i32, i32
  }
  func.func @transform_9(%arg0: i32) -> (i32, i32) {
    %c0_i32 = arith.constant 0 : i32
    %c0_i32_0 = arith.constant 0 : i32
    return %c0_i32, %arg0 : i32, i32
  }
}

</mosaic_0001>

<bundles_post_ra>
// kernel: tpu_custom_call.1
= control target key start
LH: loop header
LB: loop body
LE: loop exit
PB: predicated region body
PF: predicated region fallthrough
CT: control target
= control target key end

     0   :  { %s536_s0 = inlined_call_operand.vmem [shape: bf16[8,4], index: 0, kind: input, shape index: {}]   ;;  %s537_s1 = inlined_call_operand.vmem [shape: bf16[32,8], index: 1, kind: input, shape index: {}]   ;;  %s538_s2 = inlined_call_operand.vmem [shape: f32[32,1], index: 2, kind: input, shape index: {}]   ;;  %s539_s3 = inlined_call_operand.vmem [shape: bf16[16,32], index: 3, kind: input, shape index: {}]   ;;  %s540_s4 = inlined_call_operand.vmem [shape: f32[16,1], index: 4, kind: input, shape index: {}]   ;;  %s541_s5 = inlined_call_operand.vmem [shape: bf16[4,16], index: 5, kind: input, shape index: {}]   ;;  %s542_s6 = inlined_call_operand.vmem [shape: f32[4,1], index: 6, kind: input, shape index: {}]   ;;  %s543_s7 = inlined_call_operand.vmem [shape: bf16[1,4], index: 7, kind: input, shape index: {}]   ;;  %s544_s8 = inlined_call_operand.<no memory space> [shape: f32[1,1], index: 8, kind: input, shape index: {}]   ;;  %s545_s9 = inlined_call_operand.hbm [shape: f32[1,4], index: 9, kind: output, shape index: {}]  }
   0x1   :  { %v14_v0 = vstv %s544_s8 }
   0x2   :  { %15 = vst [vmem:[#allocation2] sm:$0x1] %v14_v0 }
   0x3   :  { %v36_v1 = vld [vmem:[%s536_s0] sm:$0xf]  ;;  %vm82_vm0 = vcmask 1043456   ;;  %vm75_vm1 = vcmask 64512   ;;  %v395_v4 = vld [vmem:[%s537_s1 + $0x8] sm:$0xff]   ;;  %v425_v6 = vmov 0  }
   0x4   :  { %v394_v2 = vld [vmem:[%s537_s1] sm:$0xff]   ;;  %387 = vmatprep.subr.msk.bf16.mxu0 %vm82_vm0, %v36_v1  ;;  %v84_v3 = vsel %vm82_vm0, %v36_v1, 0  ;;  %392 = vset.pattern.permute.xlu0 %v425_v6  ;;  %v43_v7 = vld [vmem:[%s538_s2 + $0x10] sm:$0xff]  ;;  %v42_v8 = vld [vmem:[%s538_s2 + $0x8] sm:$0xff] }
   0x5   :  { %362 = vmatpush3.bf16.msra.mxu0 %v84_v3  ;;  %363 = vmatprep.mubr.msk.bf16.mxu0 %vm75_vm1, %v394_v2  ;;  %v41_v5 = vld [vmem:[%s538_s2] sm:$0xff]  ;;  %v44_v9 = vld [vmem:[%s538_s2 + $0x18] sm:$0xff] }
   0x6   :  { %393 = vset.pattern.permute.xlu1 %v425_v6  ;;  %47 = vperm.xlu0 %392, %v41_v5  }
   0x7   :  { %57 = vperm.xlu1 %393, %v43_v7  }
   0x8   :  { %364 = vmatmul.mubr.msk.bf16.vlgmr.msra.gmra.mrb[0].mxu0 %vm75_vm1, %v395_v4 }
   0x9   :  { %16 = vsyncpa [#allocation4], 0  ;;  %v143_v10 = vld [vmem:[%s540_s4] sm:$0xff]  ;;  %v144_v11 = vld [vmem:[%s540_s4 + $0x8] sm:$0xff]  ;;  %v426_v14 = vmov 0.0   ;;  %vm427_vm2 = vmmov 0   ;;  %v268_v56 = vlaneseq }
   0xa   :  { %52 = vperm.xlu0 %392, %v42_v8   ;;  %v209_v12 = vld [vmem:[%s542_s6] sm:$0xf]  ;;  %367 = vmatprep.subr.bf16.mxu1 %v426_v14  ;;  %vm160_vm3 = vcmask 261120   ;;  %vm215_vm4 = vcmask 130048   ;;  %vm276_vm5 = vcmask 1041408   ;;  %vm272_vm6 = vcmask 31744  }
   0xb   :  { %62 = vperm.xlu1 %393, %v44_v9   ;;  %v262_v13 = vld [vmem:[#allocation2] sm:$0x1]  ;;  %375 = vmatprep.subr.bf16.mxu0 %v426_v14  ;;  %v269_v57 = vshrl.u32 %v268_v56, 7  ;;  %vm326_vm7 = vcmask 24576  }
   0xc   :  { %371 = vmatprep.mubr.msk.bf16.mxu1 %vm427_vm2, %v426_v14  ;;  %377 = vmatprep.mubr.msk.bf16.mxu0 %vm427_vm2, %v426_v14  ;;  %v396_v33 = vld [vmem:[%s539_s3] sm:$0xff]  }
   0xd   :  { %v208_v45 = vld [vmem:[%s541_s5] sm:$0x3]  ;;  %v270_v58 = vsub.s32 0, %v269_v57  ;;  %s428_s5 = smov [#allocation3]  }
   0xe   :  { %147 = vperm.xlu0 %392, %v143_v10   ;;  %v261_v55 = vld [vmem:[%s543_s7] sm:$0x1]  ;;  %s334_s30 = sshll.u32 %s428_s5, 4  ;;  %s335_s30 = int_to_ptr.vmem [resolvable:$true] %s334_s30 }
   0xf   :  { %152 = vperm.xlu1 %393, %v144_v11   ;;  %s401_s7 = scalar_lea.vmem %s335_s30, 16  ;;  %s405_s10 = scalar_lea.vmem %s335_s30, 32 }
  0x10   :  { %p402_p0 = scmp.ne.s32.totalorder %s335_s30, %s401_s7  ;;  %p406_p1 = scmp.lt.s32.totalorder %s335_s30, %s335_s30 }
  0x11   :  { %p407_p2 = scmp.lt.s32.totalorder %s405_s10, %s401_s7 }
  0x12   :  { %212 = vperm.xlu0 %392, %v209_v12  }
  0x13   :  { %265 = vperm.xlu1 %393, %v262_v13   ;;  %p408_p3 = por %p407_p2, %p406_p1 }
  0x15   :  { %p409_p4 = pnand %p408_p3, %p402_p0 }
  0x85   :  { %v48_v16 = vpop.permute.xlu0 %47 }
  0x86   :  { %v58_v15 = vpop.permute.xlu1 %57 }
  0x89   :  { %v53_v23 = vpop.permute.xlu0 %52 }
  0x8a   :  { %v63_v20 = vpop.permute.xlu1 %62 }
  0x8d   :  { %v148_v34 = vpop.permute.xlu0 %147 }
  0x8e   :  { %v153_v38 = vpop.permute.xlu1 %152 }
  0x91   :  { %v213_v46 = vpop.permute.xlu0 %212 }
  0x92   :  { %v266_v59 = vpop.permute.xlu1 %265 }
  0x93   :  { %v271_v60 = vrot.slane %v266_v59, %v270_v58 }
  0xdb   :  { %v365_v17 = vpop.f32.mrb[0].mxu0 }
  0xdc   :  { %v129_v18 = vadd.f32 %v365_v17, %v58_v15  ;;  %v120_v19 = vpop.f32.mrb[1].mxu0 }
  0xdd   :  { %v121_v21 = vadd.f32 %v120_v19, %v48_v16  ;;  %v366_v22 = vpop.f32.mrb[2].mxu0 }
  0xde   :  { %v132_v24 = vadd.f32 %v366_v22, %v63_v20  ;;  %v123_v25 = vpop.f32.mrb[3].mxu0  ;;  %v137_v27 = vmax.f32 %v129_v18, 0.0 }
  0xdf   :  { %v124_v26 = vadd.f32 %v123_v25, %v53_v23  ;;  %v135_v29 = vmax.f32 %v121_v21, 0.0 }
  0xe0   :  { %v138_v28 = vmax.f32 %v132_v24, 0.0 }
  0xe1   :  { %v136_v30 = vmax.f32 %v124_v26, 0.0 }
  0xe2   :  { %v140_v31 = vpack.c.bf16 %v138_v28, %v137_v27 }
  0xe3   :  { %v139_v32 = vpack.c.bf16 %v136_v30, %v135_v29 }
  0xe5   :  { %368 = vmatpush3.bf16.msra.mxu1 %v139_v32 }
  0xe6   :  { %369 = vmatprep.subr.bf16.mxu1 %v426_v14 }
  0xe9   :  { %370 = vmatpush3.bf16.msra.mxu1 %v140_v31 }
  0xea   :  { %381 = vmatprep.subr.bf16.mxu1 %v426_v14 }
  0xec   :  { %372 = vmatmul.mubr.msk.bf16.vlgmr.msra.gmra.mrb[0].mxu1 %vm160_vm3, %v396_v33 }
  0xed   :  { %383 = vmatprep.mubr.msk.bf16.mxu1 %vm427_vm2, %v426_v14 }
 0x1bf   :  { %v198_v35 = vpop.f32.mrb[0].mxu1 }
 0x1c0   :  { %v199_v36 = vadd.f32 %v198_v35, %v148_v34  ;;  %v373_v37 = vpop.f32.mrb[1].mxu1 }
 0x1c1   :  { %v201_v39 = vpop.f32.mrb[2].mxu1 }
 0x1c2   :  { %v202_v40 = vadd.f32 %v201_v39, %v153_v38  ;;  %v374_v41 = vpop.f32.mrb[3].mxu1  ;;  %v205_v42 = vmax.f32 %v199_v36, 0.0 }
 0x1c4   :  { %v206_v43 = vmax.f32 %v202_v40, 0.0 }
 0x1c6   :  { %v207_v44 = vpack.c.bf16 %v206_v43, %v205_v42 }
 0x1c8   :  { %376 = vmatpush3.bf16.msra.mxu0 %v207_v44 }
 0x1cb   :  { %378 = vmatmul.mubr.msk.bf16.vlgmr.msra.gmra.mrb[4].mxu0 %vm215_vm4, %v208_v45 }
 0x29e   :  { %v253_v47 = vpop.f32.mrb[4].mxu0 }
 0x29f   :  { %v254_v48 = vadd.f32 %v253_v47, %v213_v46  ;;  %v379_v49 = vpop.f32.mrb[5].mxu0 }
 0x2a0   :  { %v256_v50 = vpop.f32.mrb[6].mxu0 }
 0x2a1   :  { %v259_v51 = vmax.f32 %v254_v48, 0.0  ;;  %v380_v52 = vpop.f32.mrb[7].mxu0 }
 0x2a3   :  { %v260_v53 = vpack.c.bf16 %v259_v51, %v259_v51 }
 0x2a5   :  { %v278_v54 = vsel %vm276_vm5, %v260_v53, 0 }
 0x2a6   :  { %382 = vmatpush3.bf16.msra.mxu1 %v278_v54 }
 0x2a9   :  { %384 = vmatmul.mubr.msk.bf16.vlgmr.msra.gmra.mrb[4].mxu1 %vm272_vm6, %v261_v55 }
 0x37c   :  { %v314_v61 = vpop.f32.mrb[4].mxu1 }
 0x37d   :  { %v315_v62 = vadd.f32 %v314_v61, %v271_v60  ;;  %v385_v63 = vpop.f32.mrb[5].mxu1 }
 0x37e   :  { %v317_v0 = vpop.f32.mrb[6].mxu1 }
 0x37f   :  { %v350_v1 = vmul.f32 -1.442695, %v315_v62  ;;  %v386_v2 = vpop.f32.mrb[7].mxu1 }
 0x381   :  { %397 = vpow2.f32 %v350_v1 }
 0x38b   :  { %v398_v3 = vpop.eup %397 }
 0x38c   :  { %v323_v4 = vadd.f32 1.0, %v398_v3 }
 0x38e   :  { %399 = vrcp.f32 %v323_v4 }
 0x398   :  { %v400_v5 = vpop.eup %399 }
 0x399   :  { %327 = vst.msk [vmem:[#allocation3] sm:$0x1] %vm326_vm7, %v400_v5 }
 0x39a   :  { %412 = shalt.err (!%p409_p4)
}
 0x39b   :  { %s413_s13 = scalar_lea.hbm %s545_s9, 16 }
 0x39c   :  { %p414_p5 = scmp.ne.s32.totalorder %s545_s9, %s413_s13  ;;  %p417_p6 = scmp.lt.u32.totalorder %s413_s13, %s545_s9 }
 0x39e   :  { %p419_p7 = pnand %p417_p6, %p414_p5 }
 0x3a0   :  { %422 = shalt.err (!%p419_p7)
}
 0x3a1   :  { %337 = dma.vmem_to_hbm [thread:$0]  %s335_s30, 16, %s545_s9, [#allocation4]  }
 0x3a2   :  { %423 = dma.done.wait [#allocation4], 16  }
 0x3a3   :  { %424 = vsyncadd [#allocation4], 4294967280 }
 0x3a4   :  { %341 = vsyncpa [#allocation4], 1 }

</bundles_post_ra>
